<compile_context>
chip_gen: v7x
topology: tpu7x:2x2x1
jax: 0.10.0
libtpu: 0.0.40
codegen_flags: <defaults>
</compile_context>

<pallas_src>
import jax
import jax.numpy as jnp
from jax.experimental import pallas as pl
from jax.experimental.pallas import tpu as pltpu

CIN = 11
COUT = 11
PAD = 5
SLOPE = 3.146
LANE = 128
# Lane (spatial) elements per grid step; multiple of 128.
MAX_SPATIAL_TILE = 32768


def conv1x1_leaky_kernel(x_ref, w_ref, b_ref, o_ref):
    # x_ref: (CIN, T) lane-dense, w_ref: (COUT, CIN), b_ref: (COUT, 1),
    # o_ref: (COUT, T) lane-dense.
    v = jnp.dot(w_ref[...], x_ref[...], preferred_element_type=jnp.float32)
    v = v + b_ref[...]
    o_ref[...] = jnp.where(v > 0, v, v * SLOPE).astype(o_ref.dtype)


def _round_up(a, b):
    return ((a + b - 1) // b) * b


def model_forward(x, weight, bias):
    """x: (N, CIN, H, W) f32; weight: (COUT, CIN) (1x1 conv kernel squeezed
    from (COUT, CIN, 1, 1)); bias: (COUT,).
    Returns (N, COUT, H + 2*PAD, W + 2*PAD) = where(v > 0, v, v * 3.146) of
    Conv2d(11, 11, 1, stride=1, padding=5)."""
    n, cin, h, w = x.shape
    assert cin == CIN, x.shape
    assert weight.shape == (COUT, CIN), weight.shape   # caller squeezes (COUT,CIN,1,1)
    assert bias.shape == (COUT,), bias.shape

    hp, wp = h + 2 * PAD, w + 2 * PAD
    hw_p = hp * wp

    # Zero-pad the input once (pointwise 1x1 conv on the padded input produces
    # the full padded output, borders included, in a single kernel pass).
    xp = jnp.pad(x.astype(jnp.float32),
                 ((0, 0), (0, 0), (PAD, PAD), (PAD, PAD)))
    # NCHW -> (N, CIN, HP*WP) is a free reshape (channels-major, spatial-last).
    xp_flat = xp.reshape(n, CIN, hw_p)

    # Spatial tile: as large as possible (multiple of 128 lanes), no host pad
    # to a tile multiple -- the ragged last block is masked inside the pipeline.
    tile = min(MAX_SPATIAL_TILE, _round_up(hw_p, LANE))
    if n == 1 and hw_p > LANE:
        # Guarantee >= 2 parallel grid steps so both v7x TensorCores are used.
        tile = min(tile, _round_up(pl.cdiv(hw_p, 2), LANE))
    num_spatial = pl.cdiv(hw_p, tile)

    w2 = weight.astype(jnp.float32)                  # (COUT, CIN), grid-resident
    b2 = bias.reshape(COUT, 1).astype(jnp.float32)   # (COUT, 1),  grid-resident

    grid = (n, num_spatial)
    out_flat = pl.pallas_call(
        conv1x1_leaky_kernel,
        out_shape=jax.ShapeDtypeStruct((n, COUT, hw_p), jnp.float32),
        grid_spec=pltpu.PrefetchScalarGridSpec(
            num_scalar_prefetch=0,
            grid=grid,
            in_specs=[
                # batch dim squeezed; kernel sees (CIN, tile)
                pl.BlockSpec((None, CIN, tile), lambda b, j: (b, 0, j)),
                pl.BlockSpec((COUT, CIN), lambda b, j: (0, 0)),
                pl.BlockSpec((COUT, 1), lambda b, j: (0, 0)),
            ],
            out_specs=pl.BlockSpec((None, COUT, tile), lambda b, j: (b, 0, j)),
        ),
        compiler_params=pltpu.CompilerParams(
            dimension_semantics=("parallel", "parallel"),
            vmem_limit_bytes=32 * 1024 * 1024,
        ),
    )(xp_flat, w2, b2)

    # Free reshape back to NCHW on the padded spatial extent; no border fill.
    return out_flat.reshape(n, COUT, hp, wp)


if __name__ == "__main__":
    key = jax.random.PRNGKey(0)
    kx, kw, kb = jax.random.split(key, 3)

    # Small shapes consistent with the module: batch=2, channels=11, spatial=16.
    x = jax.random.normal(kx, (2, CIN, 16, 16), dtype=jnp.float32)
    # Conv2d(11, 11, 1) params: weight (11, 11, 1, 1) squeezed to (11, 11), bias (11,)
    weight = jax.random.normal(kw, (COUT, CIN), dtype=jnp.float32) * 0.1
    bias = jax.random.normal(kb, (COUT,), dtype=jnp.float32) * 0.1

    fwd = jax.jit(model_forward)
    out = fwd(x, weight, bias)
    jax.block_until_ready(out)

    # Pure-JAX reference: Conv2d(11, 11, 1, padding=5) + where(v>0, v, v*3.146).
    x_pad = jnp.pad(x, ((0, 0), (0, 0), (PAD, PAD), (PAD, PAD)))
    v1 = jnp.einsum("nchw,oc->nohw", x_pad, weight) + bias[None, :, None, None]
    ref = jnp.where(v1 > 0, v1, v1 * SLOPE)

    assert out.shape == (2, COUT, 26, 26), out.shape
    assert jnp.allclose(out, ref, atol=1e-5, rtol=1e-5)

    print("KERNEL_OK")
</pallas_src>

<mosaic_0001>
module attributes {stable_mosaic.version = 11 : i64} {
  func.func @conv1x1_leaky_kernel(%arg0: i32, %arg1: i32, %arg2: memref<1x11x768xf32, #tpu.memory_space<vmem>>, %arg3: memref<11x11xf32, #tpu.memory_space<vmem>>, %arg4: memref<11x1xf32, #tpu.memory_space<vmem>>, %arg5: memref<1x11x768xf32, #tpu.memory_space<vmem>>) attributes {dimension_semantics = [#tpu.dimension_semantics<parallel>, #tpu.dimension_semantics<parallel>], iteration_bounds = array<i64: 2, 1>, scalar_prefetch = 0 : i64, scratch_operands = 0 : i64, tpu.core_type = #tpu.core_type<tc>, window_params = [{transform_indices = @transform_0, window_bounds = array<i64: 1, 11, 768>}, {pipeline_mode = #tpu.pipeline_mode<synchronous>, transform_indices = @transform_1, window_bounds = array<i64: 11, 11>}, {pipeline_mode = #tpu.pipeline_mode<synchronous>, transform_indices = @transform_2, window_bounds = array<i64: 11, 1>}, {transform_indices = @transform_3, window_bounds = array<i64: 1, 11, 768>}]} {
    %c0 = arith.constant 0 : index
    %c0_0 = arith.constant 0 : index
    %0 = vector.load %arg3[%c0, %c0_0] : memref<11x11xf32, #tpu.memory_space<vmem>>, vector<11x11xf32>
    %c0_1 = arith.constant 0 : index
    %c0_2 = arith.constant 0 : index
    %c0_3 = arith.constant 0 : index
    %1 = vector.load %arg2[%c0_1, %c0_2, %c0_3] : memref<1x11x768xf32, #tpu.memory_space<vmem>>, vector<1x11x768xf32>
    %2 = vector.shape_cast %1 : vector<1x11x768xf32> to vector<11x768xf32>
    %cst = arith.constant dense<0.000000e+00> : vector<11x768xf32>
    %3 = tpu.matmul %0, %2, %cst {dimension_numbers = #tpu.dot_dimension_numbers<[1], [0], [0], [1], [0, 0, 1, 1], [], []>} : vector<11x11xf32>, vector<11x768xf32>, vector<11x768xf32> -> vector<11x768xf32>
    %c0_4 = arith.constant 0 : index
    %c0_5 = arith.constant 0 : index
    %4 = vector.load %arg4[%c0_4, %c0_5] : memref<11x1xf32, #tpu.memory_space<vmem>>, vector<11x1xf32>
    %5 = vector.broadcast %4 : vector<11x1xf32> to vector<11x768xf32>
    %6 = arith.addf %3, %5 : vector<11x768xf32>
    %cst_6 = arith.constant 0.000000e+00 : f32
    %7 = vector.broadcast %cst_6 : f32 to vector<11x768xf32>
    %8 = arith.cmpf ogt, %6, %7 : vector<11x768xf32>
    %cst_7 = arith.constant 3.146000e+00 : f32
    %9 = vector.broadcast %cst_7 : f32 to vector<11x768xf32>
    %10 = arith.mulf %6, %9 : vector<11x768xf32>
    %11 = arith.select %8, %6, %10 : vector<11x768xi1>, vector<11x768xf32>
    %c0_8 = arith.constant 0 : index
    %c0_9 = arith.constant 0 : index
    %c0_10 = arith.constant 0 : index
    %12 = vector.load %arg5[%c0_8, %c0_9, %c0_10] : memref<1x11x768xf32, #tpu.memory_space<vmem>>, vector<1x11x768xf32>
    %13 = vector.shape_cast %12 : vector<1x11x768xf32> to vector<11x768xf32>
    %14 = vector.shape_cast %11 : vector<11x768xf32> to vector<1x11x768xf32>
    tpu.vector_store %arg5[%c0_8, %c0_9, %c0_10], %14 {strides = array<i32>} : memref<1x11x768xf32, #tpu.memory_space<vmem>>, vector<1x11x768xf32>,
    return
  }
  func.func @transform_0(%arg0: i32, %arg1: i32) -> (i32, i32, i32) {
    %c0_i32 = arith.constant 0 : i32
    %c0_i32_0 = arith.constant 0 : i32
    return %arg0, %c0_i32, %arg1 : i32, i32, i32
  }
  func.func @transform_1(%arg0: i32, %arg1: i32) -> (i32, i32) {
    %c0_i32 = arith.constant 0 : i32
    %c0_i32_0 = arith.constant 0 : i32
    %c0_i32_1 = arith.constant 0 : i32
    return %c0_i32, %c0_i32_0 : i32, i32
  }
  func.func @transform_2(%arg0: i32, %arg1: i32) -> (i32, i32) {
    %c0_i32 = arith.constant 0 : i32
    %c0_i32_0 = arith.constant 0 : i32
    %c0_i32_1 = arith.constant 0 : i32
    return %c0_i32, %c0_i32_0 : i32, i32
  }
  func.func @transform_3(%arg0: i32, %arg1: i32) -> (i32, i32, i32) {
    %c0_i32 = arith.constant 0 : i32
    %c0_i32_0 = arith.constant 0 : i32
    return %arg0, %c0_i32, %arg1 : i32, i32, i32
  }
}

</mosaic_0001>

<bundles_post_ra>
// kernel: model_forward.1
= control target key start
LH: loop header
LB: loop body
LE: loop exit
PB: predicated region body
PF: predicated region fallthrough
CT: control target
= control target key end

     0   :  { %s745_s12 = smov 0   ;;  %s747_s13 = smov 0   ;;  %s837_s0 = inlined_call_operand.vmem [shape: f32[2,11,676], index: 0, kind: input, shape index: {}]   ;;  %s838_s1 = inlined_call_operand.vmem [shape: f32[11,11], index: 1, kind: input, shape index: {}]   ;;  %s839_s2 = inlined_call_operand.vmem [shape: f32[11,1], index: 2, kind: input, shape index: {}]   ;;  %s840_s3 = inlined_call_operand.vmem [shape: f32[2,11,676], index: 3, kind: output, shape index: {}]  }
   0x1   :  { %s749_s14 = smov 0  }
   0x2 LB: > { %s25_s15 = sadd.s32 1, %s716_s13  ;;  %p632_p0 = scmp.ge.s32.totalorder %s720_s14, 1  ;;  %s720_s14 = sphi %s749_s14, %s13_s14   ;;  %s716_s13 = sphi %s747_s13, %s844_s13   ;;  %s712_s12 = sphi %s745_s12, %s843_s12  }
   0x3   : > { %p27_p1 = scmp.ge.s32.totalorder %s25_s15, 2  ;;  %p158_p2 = scmp.lt.s32.totalorder %s720_s14, 3 }
   0x5   : > { %s846_s15 = smov (%p27_p1, %s25_s15), 0  ;;  %p159_p3 = pnand %p632_p0, %p158_p2 }
   0x6   : > { %p191_p4 = scmp.lt.s32.totalorder (!%p159_p3), %s712_s12, 1  ;;  %v722_v0 = vmov (!%p159_p3), 0.0   ;;  %v224_v1 = vld [vmem:[%s839_s2] sm:$0xff] (!%p159_p3)  ;;  %v723_v2 = vmov (!%p159_p3), 0   ;;  %vm243_vm0 = vcmask (!%p159_p3), 1042432   ;;  %vm724_vm1 = vmmov (!%p159_p3), 1  }
   0x7   : > { %162 = sbr.rel (%p159_p3) target bundleno = 254 (0xfe), region = 32  ;;  %326 = vmatprep.mubr.f32.mxu0 (!%p159_p3), %v722_v0  ;;  %332 = vmatprep.mubr.f32.mxu1 (!%p159_p3), %v722_v0  ;;  %v225_v3 = vld [vmem:[%s839_s2 + $0x8] sm:$0x7] (!%p159_p3)  ;;  %vm777_vm2 = vmpackc.low (!%p159_p3), %vm243_vm0, %vm724_vm1  ;;  %v210_v21 = vld [vmem:[%s838_s1] sm:$0xff] (!%p159_p3)  ;;  %vm236_vm3 = vcmask (!%p159_p3), 89088  }
   0x8   : > { %697 = vset.pattern.permute.xlu0 (!%p159_p3), %v723_v2  ;;  %v211_v22 = vld [vmem:[%s838_s1 + $0x8] sm:$0x7] (!%p159_p3) }
   0x9   : > { %228 = vperm.xlu0 (!%p159_p3), %697, %v224_v1  }
   0xd   : > { %233 = vperm.xlu0 (!%p159_p3), %697, %v225_v3  }
   0xe   : > { %s848_s12 = smov (!%p191_p4, %s712_s12), 1 }
   0xf   : > { %s669_s18 = smul.u32 96, %s848_s12 }
  0x11   : > { %s198_s23 = scalar_lea.vmem %s837_s0, %s669_s18  ;;  %s814_s30 = scalar_lea.vmem %s840_s3, %s669_s18 }
  0x12   : > { %v213_v5 = vld [vmem:[%s198_s23 + $0x8] sm:$0xff]  ;;  %v219_v6 = vld [vmem:[%s198_s23 + $0x38] sm:$0x7]  ;;  %v212_v7 = vld [vmem:[%s198_s23] sm:$0xff] }
  0x13   : > { %v649_v8 = vpack.c.bf16 %v219_v6, %v213_v5  ;;  %v218_v9 = vld [vmem:[%s198_s23 + $0x30] sm:$0x7]  ;;  %v215_v10 = vld [vmem:[%s198_s23 + $0x18] sm:$0xff]  ;;  %v221_v11 = vld [vmem:[%s198_s23 + $0x48] sm:$0x7] }
  0x14   : > { %v652_v12 = vpack.c.bf16 %v218_v9, %v212_v7  ;;  %v655_v13 = vpack.c.bf16 %v221_v11, %v215_v10  ;;  %v217_v14 = vld [vmem:[%s198_s23 + $0x28] sm:$0xff]  ;;  %v223_v15 = vld [vmem:[%s198_s23 + $0x58] sm:$0x7]  ;;  %v214_v16 = vld [vmem:[%s198_s23 + $0x10] sm:$0xff] }
  0x15   : > { %651 = vmatprep.subr.msk.bf16.mxu0 %vm777_vm2, %v649_v8  ;;  %667 = vmatprep.subr.msk.bf16.mxu1 %vm777_vm2, %v649_v8  ;;  %v661_v17 = vpack.c.bf16 %v223_v15, %v217_v14  ;;  %v220_v18 = vld [vmem:[%s198_s23 + $0x40] sm:$0x7]  ;;  %v222_v20 = vld [vmem:[%s198_s23 + $0x50] sm:$0x7] }
  0x16   : > { %v216_v19 = vld [vmem:[%s198_s23 + $0x20] sm:$0xff]  ;;  %654 = vmatpush1.bf16.msk.msra.mxu0 %vm777_vm2, %v652_v12  ;;  %668 = vmatpush1.bf16.msk.msra.mxu1 %vm777_vm2, %v652_v12  ;;  %v658_v23 = vpack.c.bf16 %v220_v18, %v214_v16 }
  0x17   : > { %v664_v24 = vpack.c.bf16 %v222_v20, %v216_v19  ;;  %657 = vmatprep.subr.msk.bf16.mxu1 %vm777_vm2, %v655_v13  ;;  %663 = vmatprep.subr.msk.bf16.mxu0 %vm777_vm2, %v661_v17 }
  0x19   : > { %637 = vmatmul.mubr.msk.f32.vlgmr.msra.gmra.mrb[0].mxu0 %vm236_vm3, %v210_v21  ;;  %638 = vmatmul.mubr.msk.f32.vlgmr.msra.gmra.mrb[0].mxu1 %vm236_vm3, %v211_v22 }
  0x1a   : > { %660 = vmatpush1.bf16.msk.msra.mxu1 %vm777_vm2, %v658_v23  ;;  %666 = vmatpush1.bf16.msk.msra.mxu0 %vm777_vm2, %v664_v24 }
  0x1b   : > { %403 = vmatprep.mubr.f32.mxu1 %v722_v0  ;;  %480 = vmatprep.mubr.f32.mxu0 %v722_v0 }
  0x1d   : > { %641 = vmatmul.mubr.msk.f32.vlgmr.msra.gmra.mrb[2].mxu1 %vm236_vm3, %v210_v21  ;;  %645 = vmatmul.mubr.msk.f32.vlgmr.msra.gmra.mrb[2].mxu0 %vm236_vm3, %v210_v21 }
  0x1e   : > { %409 = vmatprep.mubr.f32.mxu1 %v722_v0  ;;  %486 = vmatprep.mubr.f32.mxu0 %v722_v0 }
  0x21   : > { %642 = vmatmul.mubr.msk.f32.gmra.mrb[4].mxu1 %vm236_vm3, %v211_v22  ;;  %646 = vmatmul.mubr.msk.f32.gmra.mrb[4].mxu0 %vm236_vm3, %v211_v22 }
  0x88   : > { %v229_v25 = vpop.permute.xlu0 %228 }
  0x8c   : > { %v234_v26 = vpop.permute.xlu0 %233 }
  0xec   : > { %v328_v27 = vpop.f32.mrb[0].mxu0  ;;  %v334_v28 = vpop.f32.mrb[0].mxu1 }
  0xed   : > { %v329_v29 = vadd.f32 %v328_v27, %v229_v25  ;;  %v335_v30 = vadd.f32 %v334_v28, %v234_v26  ;;  %v330_v31 = vpop.f32.mrb[1].mxu0  ;;  %v336_v32 = vpop.f32.mrb[1].mxu1 }
  0xee   : > { %v331_v33 = vadd.f32 %v330_v31, %v229_v25  ;;  %v337_v34 = vadd.f32 %v336_v32, %v234_v26 }
  0xef   : > { %vm493_vm4 = vcmp.gt.f32.partialorder %v329_v29, 0.0  ;;  %v505_v35 = vmul.f32 3.146, %v329_v29  ;;  %vm499_vm5 = vcmp.gt.f32.partialorder %v335_v30, 0.0  ;;  %v511_v36 = vmul.f32 3.146, %v335_v30 }
  0xf0   : > { %vm494_vm6 = vcmp.gt.f32.partialorder %v331_v33, 0.0  ;;  %v506_v37 = vmul.f32 3.146, %v331_v33  ;;  %vm500_vm7 = vcmp.gt.f32.partialorder %v337_v34, 0.0  ;;  %v512_v38 = vmul.f32 3.146, %v337_v34 }
  0xf1   : > { %v517_v39 = vsel %vm493_vm4, %v329_v29, %v505_v35  ;;  %v523_v40 = vsel %vm499_vm5, %v335_v30, %v511_v36  ;;  %v405_v41 = vpop.f32.mrb[2].mxu1  ;;  %v482_v42 = vpop.f32.mrb[2].mxu0 }
  0xf2   : > { %529 = vst [vmem:[%s814_s30] sm:$0xff] %v517_v39  ;;  %535 = vst [vmem:[%s814_s30 + $0x30] sm:$0x7] %v523_v40  ;;  %v518_v43 = vsel %vm494_vm6, %v331_v33, %v506_v37  ;;  %v524_v44 = vsel %vm500_vm7, %v337_v34, %v512_v38  ;;  %v406_v45 = vadd.f32 %v405_v41, %v229_v25  ;;  %v407_v47 = vpop.f32.mrb[3].mxu1  ;;  %v484_v48 = vpop.f32.mrb[3].mxu0 }
  0xf3   : > { %v483_v46 = vadd.f32 %v482_v42, %v229_v25  ;;  %530 = vst [vmem:[%s814_s30 + $0x8] sm:$0xff] %v518_v43  ;;  %536 = vst [vmem:[%s814_s30 + $0x38] sm:$0x7] %v524_v44  ;;  %v408_v49 = vadd.f32 %v407_v47, %v229_v25  ;;  %v485_v50 = vadd.f32 %v484_v48, %v229_v25 }
  0xf4   : > { %vm495_vm8 = vcmp.gt.f32.partialorder %v406_v45, 0.0  ;;  %v507_v51 = vmul.f32 3.146, %v406_v45  ;;  %v411_v57 = vpop.f32.mrb[4].mxu1  ;;  %v488_v58 = vpop.f32.mrb[4].mxu0 }
  0xf5   : > { %vm497_vm9 = vcmp.gt.f32.partialorder %v483_v46, 0.0  ;;  %v509_v52 = vmul.f32 3.146, %v483_v46  ;;  %vm496_vm10 = vcmp.gt.f32.partialorder %v408_v49, 0.0  ;;  %v508_v53 = vmul.f32 3.146, %v408_v49 }
  0xf6   : > { %vm498_vm11 = vcmp.gt.f32.partialorder %v485_v50, 0.0  ;;  %v510_v54 = vmul.f32 3.146, %v485_v50  ;;  %v519_v55 = vsel %vm495_vm8, %v406_v45, %v507_v51  ;;  %v412_v61 = vadd.f32 %v411_v57, %v234_v26  ;;  %v413_v63 = vpop.f32.mrb[5].mxu1  ;;  %v490_v0 = vpop.f32.mrb[5].mxu0 }
  0xf7   : > { %v521_v56 = vsel %vm497_vm9, %v483_v46, %v509_v52  ;;  %531 = vst [vmem:[%s814_s30 + $0x10] sm:$0xff] %v519_v55  ;;  %v520_v59 = vsel %vm496_vm10, %v408_v49, %v508_v53  ;;  %v489_v62 = vadd.f32 %v488_v58, %v234_v26  ;;  %v414_v1 = vadd.f32 %v413_v63, %v234_v26 }
  0xf8   : > { %533 = vst [vmem:[%s814_s30 + $0x20] sm:$0xff] %v521_v56  ;;  %v522_v60 = vsel %vm498_vm11, %v485_v50, %v510_v54  ;;  %532 = vst [vmem:[%s814_s30 + $0x18] sm:$0xff] %v520_v59  ;;  %v491_v2 = vadd.f32 %v490_v0, %v234_v26  ;;  %vm501_vm12 = vcmp.gt.f32.partialorder %v412_v61, 0.0  ;;  %v513_v3 = vmul.f32 3.146, %v412_v61 }
  0xf9   : > { %534 = vst [vmem:[%s814_s30 + $0x28] sm:$0xff] %v522_v60  ;;  %vm503_vm13 = vcmp.gt.f32.partialorder %v489_v62, 0.0  ;;  %v515_v4 = vmul.f32 3.146, %v489_v62  ;;  %vm502_vm14 = vcmp.gt.f32.partialorder %v414_v1, 0.0 }
  0xfa   : > { %v514_v5 = vmul.f32 3.146, %v414_v1  ;;  %vm504_vm15 = vcmp.gt.f32.partialorder %v491_v2, 0.0  ;;  %v516_v6 = vmul.f32 3.146, %v491_v2  ;;  %v525_v7 = vsel %vm501_vm12, %v412_v61, %v513_v3 }
  0xfb   : > { %v527_v8 = vsel %vm503_vm13, %v489_v62, %v515_v4  ;;  %537 = vst [vmem:[%s814_s30 + $0x40] sm:$0x7] %v525_v7 }
  0xfc   : > { %539 = vst [vmem:[%s814_s30 + $0x50] sm:$0x7] %v527_v8  ;;  %v526_v9 = vsel %vm502_vm14, %v414_v1, %v514_v5  ;;  %v528_v10 = vsel %vm504_vm15, %v491_v2, %v516_v6 }
  0xfd   : > { %538 = vst [vmem:[%s814_s30 + $0x48] sm:$0x7] %v526_v9  ;;  %540 = vst [vmem:[%s814_s30 + $0x58] sm:$0x7] %v528_v10 }
  0xfe PF: > { %s13_s14 = sadd.s32 1, %s720_s14   ;;  %s843_s12 = smov %s716_s13 }
  0xff   : > { %p10_p5 = scmp.ge.s32.totalorder %s13_s14, 4   ;;  %s844_s13 = smov %s846_s15 }
 0x101   :  { %12 = sbr.rel (!%p10_p5) target bundleno = 2 (0x2), region = 62 }

</bundles_post_ra>
